<compile_context>
chip_gen: v7x
topology: tpu7x:2x2x1
jax: 0.10.0
libtpu: 0.0.40
codegen_flags: <defaults>
</compile_context>

<pallas_src>
import functools

import jax
import jax.numpy as jnp
from jax.experimental import pallas as pl
from jax.experimental.pallas import tpu as pltpu


def _mlp_kernel(n_layers,
                x_ref, w_in_ref, b_in_ref, w_h_ref, b_h_ref,
                w_out_ref, b_out_ref, o_ref):
    x = x_ref[...]                     # [2, tb]   (batch on lanes)
    w_in = w_in_ref[...]               # [n_nodes, 2]

    # Input layer Linear(2, n_nodes): a K=2 contraction would use ~2/128 of the
    # MXU depth and pay full fill/drain, so do it as two VPU broadcast FMAs.
    h = w_in[:, 0:1] * x[0:1, :] + w_in[:, 1:2] * x[1:2, :] + b_in_ref[...]
    h = jnp.maximum(h, 0.0)            # [n_nodes, tb]

    # Hidden layers: n_layers x (Linear(n_nodes, n_nodes) + ReLU) on the MXU,
    # f32 accumulation; batch stays on the lane axis (N = tb >= 256 columns).
    # Statically unrolled; switch to lax.fori_loop if n_layers grows past ~8.
    for l in range(n_layers):
        h = jnp.dot(w_h_ref[l], h, preferred_element_type=jnp.float32)
        h = jnp.maximum(h + b_h_ref[l], 0.0)

    # Output layer Linear(n_nodes, 1): a single output row would use 1 MXU
    # column and a masked store, so use VPU multiply + XLU sublane reduction.
    out = jnp.sum(w_out_ref[...] * h, axis=0, keepdims=True) + b_out_ref[...]
    o_ref[...] = out.astype(o_ref.dtype)   # [1, tb] lane-dense store


def summation_ann_forward(x, params, *, n_layers, tb=256):
    """Forward pass of SumationANN as a single Pallas TPU kernel.

    x: [B, 2] float32
    params: dict in PyTorch layout (see init_params)
    tb: batch tile (multiple of 128; 256+ fills the 256-wide MXU on v6e/v7x).
        The batch is zero-padded up to a multiple of tb and pad rows are
        dropped after the call, so any B works.
    returns: [B, 1] float32
    """
    B, in_dim = x.shape
    assert in_dim == 2
    assert tb % 128 == 0
    n_nodes = params["w_in"].shape[0]

    n_tiles = pl.cdiv(B, tb)
    B_pad = n_tiles * tb

    # Batch on lanes: feed x^T, zero-padded along the batch (lane) axis.
    x_t = jnp.pad(jnp.asarray(x, jnp.float32).T, ((0, 0), (0, B_pad - B)))

    # Weights stay PyTorch (out, in); biases become column vectors so they
    # broadcast along the lane (batch) axis inside the kernel.
    w_in = jnp.asarray(params["w_in"], jnp.float32)                    # [n, 2]
    b_in = jnp.asarray(params["b_in"], jnp.float32).reshape(n_nodes, 1)
    w_h = jnp.asarray(params["w_h"], jnp.float32)                      # [L, n, n]
    b_h = jnp.asarray(params["b_h"], jnp.float32).reshape(n_layers, n_nodes, 1)
    w_out = jnp.asarray(params["w_out"], jnp.float32).reshape(n_nodes, 1)
    b_out = jnp.asarray(params["b_out"], jnp.float32).reshape(1, 1)

    kernel = functools.partial(_mlp_kernel, n_layers)

    # The weight/bias specs are grid-invariant (constant index_map), so Pallas
    # only DMAs them once; at n_nodes=32 their double-buffered VMEM footprint
    # is negligible.  If n_nodes / n_layers are scaled up, single-buffer them
    # (pipeline_mode=pl.Buffered(1)) and raise vmem_limit_bytes.
    out_t = pl.pallas_call(
        kernel,
        out_shape=jax.ShapeDtypeStruct((1, B_pad), jnp.float32),
        grid_spec=pltpu.PrefetchScalarGridSpec(
            num_scalar_prefetch=0,
            grid=(n_tiles,),
            in_specs=[
                pl.BlockSpec((2, tb), lambda i: (0, i)),                          # x^T tile
                pl.BlockSpec((n_nodes, 2), lambda i: (0, 0)),                     # w_in
                pl.BlockSpec((n_nodes, 1), lambda i: (0, 0)),                     # b_in
                pl.BlockSpec((n_layers, n_nodes, n_nodes), lambda i: (0, 0, 0)),  # w_h
                pl.BlockSpec((n_layers, n_nodes, 1), lambda i: (0, 0, 0)),        # b_h
                pl.BlockSpec((n_nodes, 1), lambda i: (0, 0)),                     # w_out^T
                pl.BlockSpec((1, 1), lambda i: (0, 0)),                           # b_out
            ],
            out_specs=pl.BlockSpec((1, tb), lambda i: (0, i)),
        ),
        compiler_params=pltpu.CompilerParams(
            # Parallel batch-tile axis: with >=2 tiles this shards across the
            # two TensorCores on v7x; a no-op on v5e/v6e.
            dimension_semantics=("parallel",)),
    )(x_t, w_in, b_in, w_h, b_h, w_out, b_out)

    return out_t.reshape(B_pad, 1)[:B]


def init_params(key, n_layers, n_nodes):
    """Deterministic PyTorch-Linear-style init (uniform +/- 1/sqrt(fan_in))."""
    keys = jax.random.split(key, 6)

    def unif(k, shape, fan_in):
        bound = 1.0 / jnp.sqrt(jnp.float32(fan_in))
        return jax.random.uniform(k, shape, jnp.float32, -bound, bound)

    params = {
        "w_in": unif(keys[0], (n_nodes, 2), 2),
        "b_in": unif(keys[1], (n_nodes,), 2),
        "w_h": unif(keys[2], (n_layers, n_nodes, n_nodes), n_nodes),
        "b_h": unif(keys[3], (n_layers, n_nodes), n_nodes),
        "w_out": unif(keys[4], (1, n_nodes), n_nodes),
        "b_out": unif(keys[5], (1,), n_nodes),
    }
    return params


def reference_forward(x, params, n_layers):
    """Pure-JAX reference mirroring the PyTorch forward."""
    h = jnp.maximum(x @ params["w_in"].T + params["b_in"], 0.0)
    for l in range(n_layers):
        h = jnp.maximum(h @ params["w_h"][l].T + params["b_h"][l], 0.0)
    return h @ params["w_out"].T + params["b_out"]


if __name__ == "__main__":
    n_layers = 3
    n_nodes = 32

    key = jax.random.PRNGKey(0)
    k_x, k_p = jax.random.split(key)
    params = init_params(k_p, n_layers, n_nodes)

    # Batch 512 -> grid of 2 parallel 256-row tiles (keeps both v7x TCs busy).
    x = jax.random.uniform(k_x, (512, 2), jnp.float32, 0.0, 10.0)
    out = jax.block_until_ready(
        summation_ann_forward(x, params, n_layers=n_layers, tb=256))
    ref = reference_forward(x, params, n_layers)
    assert out.shape == (512, 1)
    assert jnp.allclose(out, ref, atol=1e-4, rtol=1e-4)

    # Non-multiple batch exercises the pad-and-slice path.
    x_small = jax.random.uniform(jax.random.PRNGKey(1), (100, 2),
                                 jnp.float32, 0.0, 10.0)
    out_small = jax.block_until_ready(
        summation_ann_forward(x_small, params, n_layers=n_layers, tb=256))
    ref_small = reference_forward(x_small, params, n_layers)
    assert out_small.shape == (100, 1)
    assert jnp.allclose(out_small, ref_small, atol=1e-4, rtol=1e-4)

    print("KERNEL_OK")
</pallas_src>

<mosaic_0001>
module attributes {stable_mosaic.version = 11 : i64} {
  func.func @_mlp_kernel(%arg0: i32, %arg1: memref<2x256xf32, #tpu.memory_space<vmem>>, %arg2: memref<32x2xf32, #tpu.memory_space<vmem>>, %arg3: memref<32x1xf32, #tpu.memory_space<vmem>>, %arg4: memref<3x32x32xf32, #tpu.memory_space<vmem>>, %arg5: memref<3x32x1xf32, #tpu.memory_space<vmem>>, %arg6: memref<32x1xf32, #tpu.memory_space<vmem>>, %arg7: memref<1x1xf32, #tpu.memory_space<vmem>>, %arg8: memref<1x256xf32, #tpu.memory_space<vmem>>) attributes {dimension_semantics = [#tpu.dimension_semantics<parallel>], iteration_bounds = array<i64: 2>, scalar_prefetch = 0 : i64, scratch_operands = 0 : i64, tpu.core_type = #tpu.core_type<tc>, window_params = [{transform_indices = @transform_0, window_bounds = array<i64: 2, 256>}, {pipeline_mode = #tpu.pipeline_mode<synchronous>, transform_indices = @transform_1, window_bounds = array<i64: 32, 2>}, {pipeline_mode = #tpu.pipeline_mode<synchronous>, transform_indices = @transform_2, window_bounds = array<i64: 32, 1>}, {pipeline_mode = #tpu.pipeline_mode<synchronous>, transform_indices = @transform_3, window_bounds = array<i64: 3, 32, 32>}, {pipeline_mode = #tpu.pipeline_mode<synchronous>, transform_indices = @transform_4, window_bounds = array<i64: 3, 32, 1>}, {pipeline_mode = #tpu.pipeline_mode<synchronous>, transform_indices = @transform_5, window_bounds = array<i64: 32, 1>}, {pipeline_mode = #tpu.pipeline_mode<synchronous>, transform_indices = @transform_6, window_bounds = array<i64: 1, 1>}, {transform_indices = @transform_7, window_bounds = array<i64: 1, 256>}]} {
    %c0 = arith.constant 0 : index
    %c0_0 = arith.constant 0 : index
    %0 = vector.load %arg1[%c0, %c0_0] : memref<2x256xf32, #tpu.memory_space<vmem>>, vector<2x256xf32>
    %c0_1 = arith.constant 0 : index
    %c0_2 = arith.constant 0 : index
    %1 = vector.load %arg2[%c0_1, %c0_2] : memref<32x2xf32, #tpu.memory_space<vmem>>, vector<32x2xf32>
    %2 = vector.extract_strided_slice %1 {offsets = [0, 0], sizes = [32, 1], strides = [1, 1]} : vector<32x2xf32> to vector<32x1xf32>
    %3 = vector.extract_strided_slice %0 {offsets = [0, 0], sizes = [1, 256], strides = [1, 1]} : vector<2x256xf32> to vector<1x256xf32>
    %4 = vector.broadcast %2 : vector<32x1xf32> to vector<32x256xf32>
    %5 = vector.broadcast %3 : vector<1x256xf32> to vector<32x256xf32>
    %6 = arith.mulf %4, %5 : vector<32x256xf32>
    %7 = vector.extract_strided_slice %1 {offsets = [0, 1], sizes = [32, 1], strides = [1, 1]} : vector<32x2xf32> to vector<32x1xf32>
    %8 = vector.extract_strided_slice %0 {offsets = [1, 0], sizes = [1, 256], strides = [1, 1]} : vector<2x256xf32> to vector<1x256xf32>
    %9 = vector.broadcast %7 : vector<32x1xf32> to vector<32x256xf32>
    %10 = vector.broadcast %8 : vector<1x256xf32> to vector<32x256xf32>
    %11 = arith.mulf %9, %10 : vector<32x256xf32>
    %12 = arith.addf %6, %11 : vector<32x256xf32>
    %c0_3 = arith.constant 0 : index
    %c0_4 = arith.constant 0 : index
    %13 = vector.load %arg3[%c0_3, %c0_4] : memref<32x1xf32, #tpu.memory_space<vmem>>, vector<32x1xf32>
    %14 = vector.broadcast %13 : vector<32x1xf32> to vector<32x256xf32>
    %15 = arith.addf %12, %14 : vector<32x256xf32>
    %cst = arith.constant 0.000000e+00 : f32
    %16 = vector.broadcast %cst : f32 to vector<32x256xf32>
    %17 = arith.maximumf %15, %16 : vector<32x256xf32>
    %c0_5 = arith.constant 0 : index
    %c0_6 = arith.constant 0 : index
    %c0_7 = arith.constant 0 : index
    %18 = vector.load %arg4[%c0_5, %c0_6, %c0_7] : memref<3x32x32xf32, #tpu.memory_space<vmem>>, vector<1x32x32xf32>
    %19 = vector.shape_cast %18 : vector<1x32x32xf32> to vector<32x32xf32>
    %cst_8 = arith.constant dense<0.000000e+00> : vector<32x256xf32>
    %20 = tpu.matmul %19, %17, %cst_8 {dimension_numbers = #tpu.dot_dimension_numbers<[1], [0], [0], [1], [0, 0, 1, 1], [], []>} : vector<32x32xf32>, vector<32x256xf32>, vector<32x256xf32> -> vector<32x256xf32>
    %c0_9 = arith.constant 0 : index
    %c0_10 = arith.constant 0 : index
    %c0_11 = arith.constant 0 : index
    %21 = vector.load %arg5[%c0_9, %c0_10, %c0_11] : memref<3x32x1xf32, #tpu.memory_space<vmem>>, vector<1x32x1xf32>
    %22 = vector.shape_cast %21 : vector<1x32x1xf32> to vector<32x1xf32>
    %23 = vector.broadcast %22 : vector<32x1xf32> to vector<32x256xf32>
    %24 = arith.addf %20, %23 : vector<32x256xf32>
    %cst_12 = arith.constant 0.000000e+00 : f32
    %25 = vector.broadcast %cst_12 : f32 to vector<32x256xf32>
    %26 = arith.maximumf %24, %25 : vector<32x256xf32>
    %c1 = arith.constant 1 : index
    %c0_13 = arith.constant 0 : index
    %c0_14 = arith.constant 0 : index
    %27 = vector.load %arg4[%c1, %c0_13, %c0_14] : memref<3x32x32xf32, #tpu.memory_space<vmem>>, vector<1x32x32xf32>
    %28 = vector.shape_cast %27 : vector<1x32x32xf32> to vector<32x32xf32>
    %cst_15 = arith.constant dense<0.000000e+00> : vector<32x256xf32>
    %29 = tpu.matmul %28, %26, %cst_15 {dimension_numbers = #tpu.dot_dimension_numbers<[1], [0], [0], [1], [0, 0, 1, 1], [], []>} : vector<32x32xf32>, vector<32x256xf32>, vector<32x256xf32> -> vector<32x256xf32>
    %c1_16 = arith.constant 1 : index
    %c0_17 = arith.constant 0 : index
    %c0_18 = arith.constant 0 : index
    %30 = vector.load %arg5[%c1_16, %c0_17, %c0_18] : memref<3x32x1xf32, #tpu.memory_space<vmem>>, vector<1x32x1xf32>
    %31 = vector.shape_cast %30 : vector<1x32x1xf32> to vector<32x1xf32>
    %32 = vector.broadcast %31 : vector<32x1xf32> to vector<32x256xf32>
    %33 = arith.addf %29, %32 : vector<32x256xf32>
    %cst_19 = arith.constant 0.000000e+00 : f32
    %34 = vector.broadcast %cst_19 : f32 to vector<32x256xf32>
    %35 = arith.maximumf %33, %34 : vector<32x256xf32>
    %c2 = arith.constant 2 : index
    %c0_20 = arith.constant 0 : index
    %c0_21 = arith.constant 0 : index
    %36 = vector.load %arg4[%c2, %c0_20, %c0_21] : memref<3x32x32xf32, #tpu.memory_space<vmem>>, vector<1x32x32xf32>
    %37 = vector.shape_cast %36 : vector<1x32x32xf32> to vector<32x32xf32>
    %cst_22 = arith.constant dense<0.000000e+00> : vector<32x256xf32>
    %38 = tpu.matmul %37, %35, %cst_22 {dimension_numbers = #tpu.dot_dimension_numbers<[1], [0], [0], [1], [0, 0, 1, 1], [], []>} : vector<32x32xf32>, vector<32x256xf32>, vector<32x256xf32> -> vector<32x256xf32>
    %c2_23 = arith.constant 2 : index
    %c0_24 = arith.constant 0 : index
    %c0_25 = arith.constant 0 : index
    %39 = vector.load %arg5[%c2_23, %c0_24, %c0_25] : memref<3x32x1xf32, #tpu.memory_space<vmem>>, vector<1x32x1xf32>
    %40 = vector.shape_cast %39 : vector<1x32x1xf32> to vector<32x1xf32>
    %41 = vector.broadcast %40 : vector<32x1xf32> to vector<32x256xf32>
    %42 = arith.addf %38, %41 : vector<32x256xf32>
    %cst_26 = arith.constant 0.000000e+00 : f32
    %43 = vector.broadcast %cst_26 : f32 to vector<32x256xf32>
    %44 = arith.maximumf %42, %43 : vector<32x256xf32>
    %c0_27 = arith.constant 0 : index
    %c0_28 = arith.constant 0 : index
    %45 = vector.load %arg6[%c0_27, %c0_28] : memref<32x1xf32, #tpu.memory_space<vmem>>, vector<32x1xf32>
    %46 = vector.broadcast %45 : vector<32x1xf32> to vector<32x256xf32>
    %47 = arith.mulf %46, %44 : vector<32x256xf32>
    %cst_29 = arith.constant dense<0.000000e+00> : vector<256xf32>
    %48 = vector.multi_reduction <add>, %47, %cst_29 [0] : vector<32x256xf32> to vector<256xf32>
    %49 = vector.shape_cast %48 : vector<256xf32> to vector<1x256xf32>
    %c0_30 = arith.constant 0 : index
    %c0_31 = arith.constant 0 : index
    %50 = vector.load %arg7[%c0_30, %c0_31] : memref<1x1xf32, #tpu.memory_space<vmem>>, vector<1x1xf32>
    %51 = vector.broadcast %50 : vector<1x1xf32> to vector<1x256xf32>
    %52 = arith.addf %49, %51 : vector<1x256xf32>
    %c0_32 = arith.constant 0 : index
    %c0_33 = arith.constant 0 : index
    %53 = vector.load %arg8[%c0_32, %c0_33] : memref<1x256xf32, #tpu.memory_space<vmem>>, vector<1x256xf32>
    tpu.vector_store %arg8[%c0_32, %c0_33], %52 {strides = array<i32>} : memref<1x256xf32, #tpu.memory_space<vmem>>, vector<1x256xf32>,
    return
  }
  func.func @transform_0(%arg0: i32) -> (i32, i32) {
    %c0_i32 = arith.constant 0 : i32
    %c0_i32_0 = arith.constant 0 : i32
    return %c0_i32, %arg0 : i32, i32
  }
  func.func @transform_1(%arg0: i32) -> (i32, i32) {
    %c0_i32 = arith.constant 0 : i32
    %c0_i32_0 = arith.constant 0 : i32
    %c0_i32_1 = arith.constant 0 : i32
    return %c0_i32, %c0_i32_0 : i32, i32
  }
  func.func @transform_2(%arg0: i32) -> (i32, i32) {
    %c0_i32 = arith.constant 0 : i32
    %c0_i32_0 = arith.constant 0 : i32
    %c0_i32_1 = arith.constant 0 : i32
    return %c0_i32, %c0_i32_0 : i32, i32
  }
  func.func @transform_3(%arg0: i32) -> (i32, i32, i32) {
    %c0_i32 = arith.constant 0 : i32
    %c0_i32_0 = arith.constant 0 : i32
    %c0_i32_1 = arith.constant 0 : i32
    %c0_i32_2 = arith.constant 0 : i32
    return %c0_i32, %c0_i32_0, %c0_i32_1 : i32, i32, i32
  }
  func.func @transform_4(%arg0: i32) -> (i32, i32, i32) {
    %c0_i32 = arith.constant 0 : i32
    %c0_i32_0 = arith.constant 0 : i32
    %c0_i32_1 = arith.constant 0 : i32
    %c0_i32_2 = arith.constant 0 : i32
    return %c0_i32, %c0_i32_0, %c0_i32_1 : i32, i32, i32
  }
  func.func @transform_5(%arg0: i32) -> (i32, i32) {
    %c0_i32 = arith.constant 0 : i32
    %c0_i32_0 = arith.constant 0 : i32
    %c0_i32_1 = arith.constant 0 : i32
    return %c0_i32, %c0_i32_0 : i32, i32
  }
  func.func @transform_6(%arg0: i32) -> (i32, i32) {
    %c0_i32 = arith.constant 0 : i32
    %c0_i32_0 = arith.constant 0 : i32
    %c0_i32_1 = arith.constant 0 : i32
    return %c0_i32, %c0_i32_0 : i32, i32
  }
  func.func @transform_7(%arg0: i32) -> (i32, i32) {
    %c0_i32 = arith.constant 0 : i32
    %c0_i32_0 = arith.constant 0 : i32
    return %c0_i32, %arg0 : i32, i32
  }
}

</mosaic_0001>

<bundles_post_ra>
// kernel: tpu_custom_call.1
= control target key start
LH: loop header
LB: loop body
LE: loop exit
PB: predicated region body
PF: predicated region fallthrough
CT: control target
= control target key end

     0   :  { %s1475_s0 = inlined_call_operand.vmem [shape: f32[2,512], index: 0, kind: input, shape index: {}]   ;;  %s1476_s1 = inlined_call_operand.vmem [shape: f32[32,2], index: 1, kind: input, shape index: {}]   ;;  %s1477_s2 = inlined_call_operand.vmem [shape: f32[32,1], index: 2, kind: input, shape index: {}]   ;;  %s1478_s3 = inlined_call_operand.vmem [shape: f32[3,32,32], index: 3, kind: input, shape index: {}]   ;;  %s1479_s4 = inlined_call_operand.vmem [shape: f32[3,32,1], index: 4, kind: input, shape index: {}]   ;;  %s1480_s5 = inlined_call_operand.vmem [shape: f32[32,1], index: 5, kind: input, shape index: {}]   ;;  %s1481_s6 = inlined_call_operand.<no memory space> [shape: f32[1,1], index: 6, kind: input, shape index: {}]   ;;  %s1482_s7 = inlined_call_operand.hbm [shape: f32[1,512], index: 7, kind: output, shape index: {}]  }
   0x1   :  { %v12_v0 = vstv %s1481_s6 }
   0x2   :  { %13 = vst [vmem:[#allocation2] sm:$0x1] %v12_v0 }
   0x3   :  { %14 = vsyncpa [#allocation4], 0 }
   0x4   :  { %16 = vsyncpa [#allocation4 + $0x1], 0  ;;  %s1229_s26 = smov 0   ;;  %s1231_s27 = smov 0  }
   0x5   :  { %s1233_s28 = smov 0   ;;  %s1235_s29 = smov 0  }
   0x6 LB: > { %s1250_s6 = sadd.s32 4294967295, %s1179_s29   ;;  %s999_s30 = sadd.s32 4294967294, %s1179_s29   ;;  %s1179_s29 = sphi %s1235_s29, %s1488_s29   ;;  %s1175_s28 = sphi %s1233_s28, %s1487_s28   ;;  %s1171_s27 = sphi %s1231_s27, %s1486_s27   ;;  %s1167_s26 = sphi %s1229_s26, %s1485_s26  }
   0x7   : > { %s1254_s8 = sadd.s32 1, %s1179_s29   ;;  %s181_s9 = sadd.s32 1, %s1175_s28 }
   0x8   : > { %s178_s10 = ssub.s32 %s1179_s29, %s1254_s8  ;;  %p191_p0 = scmp.ne.s32.totalorder %s1175_s28, %s1171_s27 }
   0x9   : > { %p179_p1 = scmp.eq.s32.totalorder %s178_s10, 0  ;;  %p192_p2 = scmp.eq.s32.totalorder %s1250_s6, 1 }
   0xa   : > { %p197_p3 = scmp.ne.s32.totalorder %s1171_s27, %s1167_s26  ;;  %p198_p4 = scmp.eq.s32.totalorder %s999_s30, 1 }
   0xb   : > { %s1265_s11 = scalar_select %p179_p1, %s1175_s28, %s181_s9  }
   0xc   : > { %p1267_p5 = por %p192_p2, %p191_p0  ;;  %p1271_p6 = por %p198_p4, %p197_p3 }
   0xd   : > { %p1002_p7 = scmp.ge.s32.totalorder %s1179_s29, 1  ;;  %p243_p8 = scmp.lt.s32.totalorder %s1179_s29, 3 }
   0xf   : > { %p244_p9 = pnand %p1002_p7, %p243_p8 }
  0x10   : > { %v285_v1 = vld [vmem:[%s1476_s1 + $0x10] sm:$0xff] (!%p244_p9)  ;;  %v283_v2 = vld [vmem:[%s1476_s1] sm:$0xff] (!%p244_p9)  ;;  %v1181_v3 = vmov (!%p244_p9), 1   ;;  %v284_v4 = vld [vmem:[%s1476_s1 + $0x8] sm:$0xff] (!%p244_p9)  ;;  %v1182_v5 = vmov (!%p244_p9), 0   ;;  %v1183_v18 = vmov (!%p244_p9), 0.0   ;;  %v308_v29 = vlaneseq (!%p244_p9) }
  0x11   : > { %247 = sbr.rel (%p244_p9) target bundleno = 916 (0x394), region = 48  ;;  %1113 = vset.pattern.permute.xlu0 (!%p244_p9), %v1181_v3  ;;  %1111 = vset.pattern.permute.xlu1 (!%p244_p9), %v1181_v3  ;;  %v286_v6 = vld [vmem:[%s1476_s1 + $0x18] sm:$0xff] (!%p244_p9)  ;;  %v385_v7 = vld [vmem:[%s1477_s2 + $0x8] sm:$0xff] (!%p244_p9)  ;;  %v384_v8 = vld [vmem:[%s1477_s2] sm:$0xff] (!%p244_p9)  ;;  %s1004_s17 = sshll.u32 (!%p244_p9), %s1250_s6, 1  ;;  %vm452_vm0 = vcmask (!%p244_p9), 261120  }
  0x12   : > { %343 = vperm.xlu0 (!%p244_p9), %1113, %v285_v1   ;;  %335 = vperm.xlu1 (!%p244_p9), %1111, %v283_v2   ;;  %v428_v9 = vld [vmem:[%s1479_s4] sm:$0xff] (!%p244_p9)  ;;  %v386_v10 = vld [vmem:[%s1477_s2 + $0x10] sm:$0xff] (!%p244_p9)  ;;  %v387_v12 = vld [vmem:[%s1477_s2 + $0x18] sm:$0xff] (!%p244_p9)  ;;  %p276_p10 = scmp.lt.s32.totalorder (!%p244_p9), %s1004_s17, 3  ;;  %v1353_v30 = vshrl.u32 (!%p244_p9), %v308_v29, 7  ;;  %s272_s16 = sand.u32 (!%p244_p9), 1, %s1171_s27  }
  0x13   : > { %v430_v11 = vld [vmem:[%s1479_s4 + $0x10] sm:$0xff] (!%p244_p9)  ;;  %v1014_v13 = vld [vmem:[%s1479_s4 + $0x20] sm:$0xff] (!%p244_p9)  ;;  %v429_v14 = vld [vmem:[%s1479_s4 + $0x8] sm:$0xff] (!%p244_p9)  ;;  %529 = vmatprep.mubr.f32.mxu0 (!%p244_p9), %v1183_v18  ;;  %541 = vmatprep.mubr.f32.mxu1 (!%p244_p9), %v1183_v18  ;;  %vm922_vm1 = vcmp.lt.s32.totalorder (!%p244_p9), %v308_v29, 256  ;;  %s926_s24 = scalar_lea.sflag (!%p244_p9), [#allocation4], %s272_s16 }
  0x14   : > { %v1016_v15 = vld [vmem:[%s1479_s4 + $0x30] sm:$0xff] (!%p244_p9)  ;;  %v431_v16 = vld [vmem:[%s1479_s4 + $0x18] sm:$0xff] (!%p244_p9)  ;;  %v1026_v17 = vld [vmem:[%s1479_s4 + $0x40] sm:$0xff] (!%p244_p9)  ;;  %v1359_v33 = vsub.s32 (!%p244_p9), 0, %v1353_v30  ;;  %v314_v34 = vsub.s32 (!%p244_p9), 2, %v1353_v30  ;;  %v352_v35 = vsub.s32 (!%p244_p9), 1, %v1353_v30 }
  0x15   : > { %v1015_v19 = vld [vmem:[%s1479_s4 + $0x28] sm:$0xff] (!%p244_p9)  ;;  %v1028_v20 = vld [vmem:[%s1479_s4 + $0x50] sm:$0xff] (!%p244_p9)  ;;  %v1017_v21 = vld [vmem:[%s1479_s4 + $0x38] sm:$0xff] (!%p244_p9)  ;;  %v356_v36 = vsub.s32 (!%p244_p9), 3, %v1353_v30 }
  0x16   : > { %1114 = vset.pattern.permute.xlu0 (!%p244_p9), %v1182_v5  ;;  %339 = vperm.xlu1 (!%p244_p9), %1111, %v284_v4   ;;  %v840_v22 = vld [vmem:[%s1480_s5] sm:$0xff] (!%p244_p9)  ;;  %v1027_v23 = vld [vmem:[%s1479_s4 + $0x48] sm:$0xff] (!%p244_p9)  ;;  %v842_v24 = vld [vmem:[%s1480_s5 + $0x10] sm:$0xff] (!%p244_p9) }
  0x17   : > { %289 = vperm.xlu0 (!%p244_p9), %1114, %v283_v2   ;;  %v1029_v25 = vld [vmem:[%s1479_s4 + $0x58] sm:$0xff] (!%p244_p9)  ;;  %v890_v26 = vld [vmem:[#allocation2] sm:$0x1] (!%p244_p9)  ;;  %v841_v27 = vld [vmem:[%s1480_s5 + $0x8] sm:$0xff] (!%p244_p9) }
  0x18   : > { %v843_v28 = vld [vmem:[%s1480_s5 + $0x18] sm:$0xff]  ;;  %s1490_s17 = smov (!%p276_p10, %s1004_s17), 3 }
  0x19   : > { %s1005_s18 = sshll.u32 %s1490_s17, 1  ;;  %s1003_s17 = sshll.u32 %s272_s16, 1 }
  0x1a   : > { %1112 = vset.pattern.permute.xlu1 %v1182_v5  ;;  %s279_s21 = scalar_lea.vmem %s1475_s0, %s1005_s18  ;;  %s1039_s18 = sshll.u32 %s1250_s6, 5 }
  0x1b   : > { %294 = vperm.xlu0 %1114, %v284_v4   ;;  %304 = vperm.xlu1 %1112, %v286_v6   ;;  %v282_v38 = vld [vmem:[%s279_s21] sm:$0xf]  ;;  %s274_s19 = scalar_lea.vmem [#allocation3], %s1003_s17  ;;  %s1433_s23 = scalar_lea.hbm %s1482_s7, %s1039_s18 }
  0x1c   : > { %v311_v40 = vrot.slane %v282_v38, %v1359_v33  ;;  %v315_v41 = vrot.slane %v282_v38, %v314_v34  ;;  %v353_v42 = vrot.slane %v282_v38, %v352_v35  ;;  %v357_v43 = vrot.slane %v282_v38, %v356_v36  ;;  %s940_s20 = sshll.u32 %s274_s19, 4  ;;  %s1185_s6 = smov [#allocation3]   ;;  %s1435_s20 = int_to_ptr.vmem [resolvable:$true] %s940_s20 }
  0x1d   : > { %s1117_s25 = scalar_lea.vmem %s1435_s20, 32  ;;  %s1121_s30 = sshll.u32 %s1185_s6, 4  ;;  %s1122_s30 = int_to_ptr.vmem [resolvable:$false] %s1121_s30 }
  0x1e   : > { %v321_v46 = vrot.slane %v311_v40, %v1359_v33  ;;  %v325_v47 = vrot.slane %v315_v41, %v1359_v33  ;;  %v363_v48 = vrot.slane %v353_v42, %v352_v35  ;;  %v367_v49 = vrot.slane %v357_v43, %v352_v35  ;;  %v424_v40 = vld [vmem:[%s1478_s3] sm:$0xff]  ;;  %v426_v41 = vld [vmem:[%s1478_s3 + $0x10] sm:$0xff]  ;;  %v425_v42 = vld [vmem:[%s1478_s3 + $0x8] sm:$0xff]  ;;  %p1118_p11 = scmp.ne.s32.totalorder %s1435_s20, %s1117_s25  ;;  %s1123_s9 = scalar_lea.vmem %s1122_s30, 64 }
  0x1f   : > { %299 = vperm.xlu0 %1114, %v285_v1   ;;  %1115 = vset.pattern.permute.xlu1 %v1181_v3  ;;  %v427_v43 = vld [vmem:[%s1478_s3 + $0x18] sm:$0xff]  ;;  %p1124_p0 = scmp.lt.s32.totalorder %s1435_s20, %s1122_s30  ;;  %p1125_p1 = scmp.lt.s32.totalorder %s1123_s9, %s1117_s25 }
  0x20   : > { %347 = vperm.xlu1 %1115, %v286_v6   ;;  %p1119_p12 = pnand %p1118_p11, %p1267_p5 }
  0x21   : > { %p1126_p2 = por %p1125_p1, %p1124_p0 }
  0x22   : > { %p1120_p13 = pneg %p1119_p12 }
  0x23   : > { %395 = vperm.xlu0 %1114, %v385_v7  }
  0x24   : > { %1116 = vset.pattern.permute.xlu1 %v1182_v5  ;;  %p1127_p3 = pnand %p1126_p2, %p1120_p13 }
  0x25   : > { %390 = vperm.xlu1 %1116, %v384_v8  }
  0x27   : > { %434 = vperm.xlu0 %1114, %v428_v9  }
  0x29   : > { %400 = vperm.xlu1 %1116, %v386_v10  }
  0x2b   : > { %444 = vperm.xlu0 %1114, %v430_v11  }
  0x2d   : > { %405 = vperm.xlu1 %1116, %v387_v12  }
  0x2f   : > { %574 = vperm.xlu0 %1114, %v1014_v13  }
  0x31   : > { %439 = vperm.xlu1 %1116, %v429_v14  }
  0x33   : > { %584 = vperm.xlu0 %1114, %v1016_v15  }
  0x35   : > { %449 = vperm.xlu1 %1116, %v431_v16  }
  0x37   : > { %713 = vperm.xlu0 %1114, %v1026_v17  }
  0x39   : > { %579 = vperm.xlu1 %1116, %v1015_v19  }
  0x3b   : > { %723 = vperm.xlu0 %1114, %v1028_v20  }
  0x3d   : > { %589 = vperm.xlu1 %1116, %v1017_v21  }
  0x3f   : > { %846 = vperm.xlu0 %1114, %v840_v22  }
  0x41   : > { %718 = vperm.xlu1 %1116, %v1027_v23  }
  0x43   : > { %856 = vperm.xlu0 %1114, %v842_v24  }
  0x45   : > { %728 = vperm.xlu1 %1116, %v1029_v25  }
  0x47   : > { %893 = vperm.xlu0 %1114, %v890_v26  }
  0x49   : > { %851 = vperm.xlu1 %1116, %v841_v27  }
  0x4d   : > { %861 = vperm.xlu1 %1116, %v843_v28  }
  0x91   : > { %v336_v31 = vpop.permute.xlu1 %335  ;;  %v344_v32 = vpop.permute.xlu0 %343 }
  0x92   : > { %v368_v58 = vmul.f32 %v363_v48, %v336_v31  ;;  %v369_v59 = vmul.f32 %v367_v49, %v336_v31  ;;  %v372_v8 = vmul.f32 %v363_v48, %v344_v32  ;;  %v373_v9 = vmul.f32 %v367_v49, %v344_v32 }
  0x95   : > { %v340_v37 = vpop.permute.xlu1 %339 }
  0x96   : > { %v290_v39 = vpop.permute.xlu0 %289  ;;  %v370_v53 = vmul.f32 %v363_v48, %v340_v37  ;;  %v371_v54 = vmul.f32 %v367_v49, %v340_v37 }
  0x97   : > { %v326_v55 = vmul.f32 %v321_v46, %v290_v39  ;;  %v327_v56 = vmul.f32 %v325_v47, %v290_v39 }
  0x99   : > { %v376_v1 = vadd.f32 %v368_v58, %v326_v55  ;;  %v377_v2 = vadd.f32 %v369_v59, %v327_v56 }
  0x9a   : > { %v295_v44 = vpop.permute.xlu0 %294  ;;  %v305_v45 = vpop.permute.xlu1 %304 }
  0x9b   : > { %v328_v50 = vmul.f32 %v321_v46, %v295_v44  ;;  %v329_v51 = vmul.f32 %v325_v47, %v295_v44  ;;  %v332_v16 = vmul.f32 %v321_v46, %v305_v45  ;;  %v333_v17 = vmul.f32 %v325_v47, %v305_v45 }
  0x9d   : > { %v378_v60 = vadd.f32 %v370_v53, %v328_v50  ;;  %v379_v61 = vadd.f32 %v371_v54, %v329_v51 }
  0x9e   : > { %v300_v52 = vpop.permute.xlu0 %299 }
  0x9f   : > { %v348_v57 = vpop.permute.xlu1 %347  ;;  %v330_v4 = vmul.f32 %v321_v46, %v300_v52  ;;  %v331_v5 = vmul.f32 %v325_v47, %v300_v52 }
  0xa0   : > { %v374_v10 = vmul.f32 %v363_v48, %v348_v57  ;;  %v375_v11 = vmul.f32 %v367_v49, %v348_v57 }
  0xa1   : > { %v380_v20 = vadd.f32 %v372_v8, %v330_v4  ;;  %v381_v21 = vadd.f32 %v373_v9, %v331_v5 }
  0xa2   : > { %v396_v62 = vpop.permute.xlu0 %395  ;;  %v382_v24 = vadd.f32 %v374_v10, %v332_v16  ;;  %v383_v27 = vadd.f32 %v375_v11, %v333_v17 }
  0xa3   : > { %v410_v63 = vadd.f32 %v396_v62, %v378_v60  ;;  %v411_v0 = vadd.f32 %v396_v62, %v379_v61 }
  0xa4   : > { %v391_v3 = vpop.permute.xlu1 %390 }
  0xa5   : > { %v408_v6 = vadd.f32 %v391_v3, %v376_v1  ;;  %v409_v7 = vadd.f32 %v391_v3, %v377_v2  ;;  %v418_v12 = vmax.f32 %v410_v63, 0.0  ;;  %v419_v13 = vmax.f32 %v411_v0, 0.0 }
  0xa6   : > { %v435_v44 = vpop.permute.xlu0 %434 }
  0xa7   : > { %v416_v14 = vmax.f32 %v408_v6, 0.0  ;;  %v417_v15 = vmax.f32 %v409_v7, 0.0 }
  0xa8   : > { %v401_v19 = vpop.permute.xlu1 %400 }
  0xa9   : > { %v1040_v22 = vpack.c.bf16 %v419_v13, %v417_v15  ;;  %v1042_v23 = vpack.c.bf16 %v418_v12, %v416_v14  ;;  %v412_v25 = vadd.f32 %v401_v19, %v380_v20  ;;  %v413_v26 = vadd.f32 %v401_v19, %v381_v21  ;;  %v1010_v12 = vld [vmem:[%s1478_s3 + $0x20] sm:$0xff]  ;;  %v1011_v13 = vld [vmem:[%s1478_s3 + $0x28] sm:$0xff]  ;;  %v1012_v14 = vld [vmem:[%s1478_s3 + $0x30] sm:$0xff] }
  0xaa   : > { %v445_v50 = vpop.permute.xlu0 %444  ;;  %v1013_v15 = vld [vmem:[%s1478_s3 + $0x38] sm:$0xff] }
  0xab   : > { %1041 = vmatprep.subr.bf16.mxu0 %v1040_v22  ;;  %1064 = vmatprep.subr.bf16.mxu1 %v1040_v22  ;;  %v420_v34 = vmax.f32 %v412_v25, 0.0  ;;  %v421_v35 = vmax.f32 %v413_v26, 0.0 }
  0xac   : > { %v406_v28 = vpop.permute.xlu1 %405  ;;  %1043 = vmatpush1.bf16.msra.mxu0 %v1042_v23  ;;  %1066 = vmatpush1.bf16.msra.mxu1 %v1042_v23 }
  0xad   : > { %v414_v31 = vadd.f32 %v406_v28, %v382_v24  ;;  %v415_v32 = vadd.f32 %v406_v28, %v383_v27 }
  0xae   : > { %v575_v19 = vpop.permute.xlu0 %574 }
  0xaf   : > { %v422_v36 = vmax.f32 %v414_v31, 0.0  ;;  %v423_v37 = vmax.f32 %v415_v32, 0.0 }
  0xb0   : > { %v440_v45 = vpop.permute.xlu1 %439 }
  0xb1   : > { %v1044_v38 = vpack.c.bf16 %v423_v37, %v421_v35  ;;  %v1046_v39 = vpack.c.bf16 %v422_v36, %v420_v34 }
  0xb2   : > { %v585_v37 = vpop.permute.xlu0 %584 }
  0xb3   : > { %1045 = vmatprep.subr.bf16.mxu0 %v1044_v38  ;;  %1065 = vmatprep.subr.bf16.mxu1 %v1044_v38 }
  0xb4   : > { %1047 = vmatpush1.bf16.msra.mxu0 %v1046_v39  ;;  %1067 = vmatpush1.bf16.msra.mxu1 %v1046_v39  ;;  %v450_v51 = vpop.permute.xlu1 %449 }
  0xb7   : > { %1006 = vmatmul.mubr.msk.f32.vlgmr.msra.gmra.mrb[0].mxu0 %vm452_vm0, %v424_v40  ;;  %1008 = vmatmul.mubr.msk.f32.vlgmr.msra.gmra.mrb[0].mxu1 %vm452_vm0, %v426_v41 }
  0xb8   : > { %535 = vmatprep.mubr.f32.mxu0 %v1183_v18  ;;  %547 = vmatprep.mubr.f32.mxu1 %v1183_v18  ;;  %v580_v21 = vpop.permute.xlu1 %579 }
  0xbb   : > { %1007 = vmatmul.mubr.msk.f32.gmra.mrb[2].mxu0 %vm452_vm0, %v425_v42  ;;  %1009 = vmatmul.mubr.msk.f32.gmra.mrb[2].mxu1 %vm452_vm0, %v427_v43 }
  0xbc   : > { %668 = vmatprep.mubr.f32.mxu1 %v1183_v18  ;;  %807 = vmatprep.mubr.f32.mxu0 %v1183_v18  ;;  %v590_v40 = vpop.permute.xlu1 %589 }
 0x18a   : > { %v531_v46 = vpop.f32.mrb[0].mxu0  ;;  %v543_v47 = vpop.f32.mrb[0].mxu1 }
 0x18b   : > { %v533_v48 = vpop.f32.mrb[1].mxu0  ;;  %v545_v49 = vpop.f32.mrb[1].mxu1  ;;  %v532_v52 = vadd.f32 %v531_v46, %v435_v44  ;;  %v544_v53 = vadd.f32 %v543_v47, %v445_v50 }
 0x18c   : > { %v534_v54 = vadd.f32 %v533_v48, %v435_v44  ;;  %v546_v55 = vadd.f32 %v545_v49, %v445_v50 }
 0x18d   : > { %v554_v0 = vmax.f32 %v532_v52, 0.0  ;;  %v558_v1 = vmax.f32 %v544_v53, 0.0  ;;  %v1022_v52 = vld [vmem:[%s1478_s3 + $0x40] sm:$0xff]  ;;  %v1023_v53 = vld [vmem:[%s1478_s3 + $0x48] sm:$0xff] }
 0x18e   : > { %v537_v56 = vpop.f32.mrb[2].mxu0  ;;  %v549_v57 = vpop.f32.mrb[2].mxu1  ;;  %v555_v4 = vmax.f32 %v534_v54, 0.0  ;;  %v559_v5 = vmax.f32 %v546_v55, 0.0  ;;  %v1024_v54 = vld [vmem:[%s1478_s3 + $0x50] sm:$0xff]  ;;  %v1025_v55 = vld [vmem:[%s1478_s3 + $0x58] sm:$0xff] }
 0x18f   : > { %v538_v58 = vadd.f32 %v537_v56, %v440_v45  ;;  %v550_v59 = vadd.f32 %v549_v57, %v450_v51  ;;  %v539_v60 = vpop.f32.mrb[3].mxu0  ;;  %v551_v61 = vpop.f32.mrb[3].mxu1 }
 0x190   : > { %v540_v62 = vadd.f32 %v539_v60, %v440_v45  ;;  %v552_v63 = vadd.f32 %v551_v61, %v450_v51  ;;  %v714_v56 = vpop.permute.xlu0 %713  ;;  %v719_v57 = vpop.permute.xlu1 %718 }
 0x191   : > { %v556_v2 = vmax.f32 %v538_v58, 0.0  ;;  %v560_v3 = vmax.f32 %v550_v59, 0.0 }
 0x192   : > { %v557_v6 = vmax.f32 %v540_v62, 0.0  ;;  %v561_v7 = vmax.f32 %v552_v63, 0.0 }
 0x193   : > { %v1050_v8 = vpack.c.bf16 %v556_v2, %v554_v0  ;;  %v1054_v9 = vpack.c.bf16 %v560_v3, %v558_v1 }
 0x194   : > { %v1048_v10 = vpack.c.bf16 %v557_v6, %v555_v4  ;;  %v1052_v11 = vpack.c.bf16 %v561_v7, %v559_v5  ;;  %v724_v58 = vpop.permute.xlu0 %723  ;;  %v729_v62 = vpop.permute.xlu1 %728 }
 0x196   : > { %1049 = vmatprep.subr.bf16.mxu1 %v1048_v10 }
 0x197   : > { %1051 = vmatpush1.bf16.msra.mxu1 %v1050_v8 }
 0x198   : > { %1053 = vmatprep.subr.bf16.mxu1 %v1052_v11  ;;  %v847_v4 = vpop.permute.xlu0 %846  ;;  %v852_v7 = vpop.permute.xlu1 %851 }
 0x19b   : > { %1055 = vmatpush1.bf16.msra.mxu1 %v1054_v9 }
 0x19e   : > { %1018 = vmatmul.mubr.msk.f32.vlgmr.msra.gmra.mrb[4].mxu1 %vm452_vm0, %v1010_v12 }
 0x19f   : > { %674 = vmatprep.mubr.f32.mxu1 %v1183_v18 }
 0x1a2   : > { %1019 = vmatmul.mubr.msk.f32.gmra.mrb[6].mxu1 %vm452_vm0, %v1011_v13 }
 0x1a3   : > { %680 = vmatprep.mubr.f32.mxu1 %v1183_v18 }
 0x1a6   : > { %1020 = vmatmul.mubr.msk.f32.gmra.mrb[8].mxu1 %vm452_vm0, %v1012_v14 }
 0x1a7   : > { %686 = vmatprep.mubr.f32.mxu1 %v1183_v18 }
 0x1aa   : > { %1021 = vmatmul.mubr.msk.f32.gmra.mrb[10].mxu1 %vm452_vm0, %v1013_v15 }
 0x271   : > { %v670_v16 = vpop.f32.mrb[4].mxu1 }
 0x272   : > { %v672_v17 = vpop.f32.mrb[5].mxu1  ;;  %v671_v20 = vadd.f32 %v670_v16, %v575_v19 }
 0x273   : > { %v673_v22 = vadd.f32 %v672_v17, %v575_v19 }
 0x274   : > { %v693_v27 = vmax.f32 %v671_v20, 0.0  ;;  %v857_v20 = vpop.permute.xlu0 %856 }
 0x275   : > { %v676_v23 = vpop.f32.mrb[6].mxu1  ;;  %v694_v31 = vmax.f32 %v673_v22, 0.0 }
 0x276   : > { %v677_v24 = vadd.f32 %v676_v23, %v580_v21  ;;  %v678_v25 = vpop.f32.mrb[7].mxu1 }
 0x277   : > { %v679_v26 = vadd.f32 %v678_v25, %v580_v21 }
 0x278   : > { %v695_v28 = vmax.f32 %v677_v24, 0.0 }
 0x279   : > { %v696_v32 = vmax.f32 %v679_v26, 0.0  ;;  %v682_v34 = vpop.f32.mrb[8].mxu1 }
 0x27a   : > { %v1058_v35 = vpack.c.bf16 %v695_v28, %v693_v27  ;;  %v684_v36 = vpop.f32.mrb[9].mxu1  ;;  %v683_v39 = vadd.f32 %v682_v34, %v585_v37  ;;  %v862_v34 = vpop.permute.xlu1 %861 }
 0x27b   : > { %v1056_v38 = vpack.c.bf16 %v696_v32, %v694_v31  ;;  %v685_v41 = vadd.f32 %v684_v36, %v585_v37 }
 0x27c   : > { %v697_v46 = vmax.f32 %v683_v39, 0.0 }
 0x27d   : > { %v688_v42 = vpop.f32.mrb[10].mxu1  ;;  %1057 = vmatprep.subr.bf16.mxu0 %v1056_v38  ;;  %v698_v48 = vmax.f32 %v685_v41, 0.0 }
 0x27e   : > { %v689_v43 = vadd.f32 %v688_v42, %v590_v40  ;;  %v690_v44 = vpop.f32.mrb[11].mxu1  ;;  %1059 = vmatpush1.bf16.msra.mxu0 %v1058_v35 }
 0x27f   : > { %v691_v45 = vadd.f32 %v690_v44, %v590_v40 }
 0x280   : > { %v699_v47 = vmax.f32 %v689_v43, 0.0 }
 0x281   : > { %v700_v49 = vmax.f32 %v691_v45, 0.0 }
 0x282   : > { %v1062_v50 = vpack.c.bf16 %v699_v47, %v697_v46  ;;  %v1184_v47 = vmov 1966171168  }
 0x283   : > { %v1060_v51 = vpack.c.bf16 %v700_v49, %v698_v48  ;;  %v906_v48 = vunpack.c.l.s4 %v1184_v47 }
 0x285   : > { %1061 = vmatprep.subr.bf16.mxu0 %v1060_v51 }
 0x286   : > { %1063 = vmatpush1.bf16.msra.mxu0 %v1062_v50  ;;  %v894_v50 = vpop.permute.xlu0 %893 }
 0x289   : > { %1030 = vmatmul.mubr.msk.f32.vlgmr.msra.gmra.mrb[4].mxu0 %vm452_vm0, %v1022_v52 }
 0x28a   : > { %813 = vmatprep.mubr.f32.mxu0 %v1183_v18 }
 0x28d   : > { %1031 = vmatmul.mubr.msk.f32.gmra.mrb[6].mxu0 %vm452_vm0, %v1023_v53 }
 0x28e   : > { %819 = vmatprep.mubr.f32.mxu0 %v1183_v18 }
 0x291   : > { %1032 = vmatmul.mubr.msk.f32.gmra.mrb[8].mxu0 %vm452_vm0, %v1024_v54  ;;  %v907_v54 = vunpack.c.0.s8 %v906_v48 }
 0x292   : > { %825 = vmatprep.mubr.f32.mxu0 %v1183_v18 }
 0x295   : > { %1033 = vmatmul.mubr.msk.f32.gmra.mrb[10].mxu0 %vm452_vm0, %v1025_v55  ;;  %v899_v55 = vrot.slane %v894_v50, %v1359_v33 }
 0x35c   : > { %v809_v59 = vpop.f32.mrb[4].mxu0 }
 0x35d   : > { %v810_v60 = vadd.f32 %v809_v59, %v714_v56  ;;  %v811_v61 = vpop.f32.mrb[5].mxu0 }
 0x35e   : > { %v812_v63 = vadd.f32 %v811_v61, %v714_v56 }
 0x35f   : > { %v832_v1 = vmax.f32 %v810_v60, 0.0  ;;  %v910_v60 = vsub.s32 %v907_v54, %v1353_v30 }
 0x360   : > { %v815_v0 = vpop.f32.mrb[6].mxu0  ;;  %v833_v18 = vmax.f32 %v812_v63, 0.0 }
 0x361   : > { %v816_v2 = vadd.f32 %v815_v0, %v719_v57  ;;  %v817_v3 = vpop.f32.mrb[7].mxu0  ;;  %v864_v10 = vmul.f32 %v847_v4, %v832_v1 }
 0x362   : > { %v818_v5 = vadd.f32 %v817_v3, %v719_v57  ;;  %v865_v14 = vmul.f32 %v847_v4, %v833_v18 }
 0x363   : > { %v834_v6 = vmax.f32 %v816_v2, 0.0 }
 0x364   : > { %v835_v8 = vmax.f32 %v818_v5, 0.0  ;;  %v821_v9 = vpop.f32.mrb[8].mxu0 }
 0x365   : > { %v866_v11 = vmul.f32 %v852_v7, %v834_v6  ;;  %v822_v12 = vadd.f32 %v821_v9, %v724_v58  ;;  %v823_v13 = vpop.f32.mrb[9].mxu0 }
 0x366   : > { %v867_v15 = vmul.f32 %v852_v7, %v835_v8  ;;  %v824_v16 = vadd.f32 %v823_v13, %v724_v58 }
 0x367   : > { %v872_v17 = vadd.f32 %v866_v11, %v864_v10  ;;  %v836_v19 = vmax.f32 %v822_v12, 0.0 }
 0x368   : > { %v881_v21 = vadd.f32 %v867_v15, %v865_v14  ;;  %v837_v22 = vmax.f32 %v824_v16, 0.0  ;;  %v827_v23 = vpop.f32.mrb[10].mxu0 }
 0x369   : > { %v868_v24 = vmul.f32 %v857_v20, %v836_v19  ;;  %v828_v25 = vadd.f32 %v827_v23, %v729_v62  ;;  %v829_v26 = vpop.f32.mrb[11].mxu0 }
 0x36a   : > { %v869_v27 = vmul.f32 %v857_v20, %v837_v22  ;;  %v830_v28 = vadd.f32 %v829_v26, %v729_v62 }
 0x36b   : > { %v873_v31 = vadd.f32 %v872_v17, %v868_v24  ;;  %v838_v32 = vmax.f32 %v828_v25, 0.0 }
 0x36c   : > { %v882_v35 = vadd.f32 %v881_v21, %v869_v27  ;;  %v839_v36 = vmax.f32 %v830_v28, 0.0 }
 0x36d   : > { %v870_v37 = vmul.f32 %v862_v34, %v838_v32 }
 0x36e   : > { %v871_v38 = vmul.f32 %v862_v34, %v839_v36 }
 0x36f   : > { %v874_v39 = vadd.f32 %v873_v31, %v870_v37 }
 0x370   : > { %v883_v40 = vadd.f32 %v882_v35, %v871_v38 }
 0x371   : > { %v875_v41 = vrot.slane %v874_v39, 4 }
 0x372   : > { %v884_v42 = vrot.slane %v883_v40, 4 }
 0x373   : > { %v876_v43 = vadd.f32 %v875_v41, %v874_v39 }
 0x374   : > { %v885_v44 = vadd.f32 %v884_v42, %v883_v40 }
 0x375   : > { %v877_v45 = vrot.slane %v876_v43, 2 }
 0x376   : > { %v886_v46 = vrot.slane %v885_v44, 2 }
 0x377   : > { %v878_v49 = vadd.f32 %v877_v45, %v876_v43 }
 0x378   : > { %v887_v51 = vadd.f32 %v886_v46, %v885_v44 }
 0x379   : > { %v879_v52 = vrot.slane %v878_v49, 1 }
 0x37a   : > { %v888_v53 = vrot.slane %v887_v51, 1 }
 0x37b   : > { %v880_v56 = vadd.f32 %v879_v52, %v878_v49 }
 0x37c   : > { %v889_v57 = vadd.f32 %v888_v53, %v887_v51 }
 0x37d   : > { %v900_v58 = vadd.f32 %v899_v55, %v880_v56 }
 0x37e   : > { %v901_v59 = vadd.f32 %v899_v55, %v889_v57 }
 0x380   : > { %v904_v61 = vcombine.low %v900_v58, %v901_v59 }
 0x382   : > { %v911_v62 = vrot.slane %v904_v61, %v910_v60 }
 0x384   : > { %v918_v63 = vrot.slane %v911_v62, %v910_v60 }
 0x386   : > { %924 = vst.msk [vmem:[%s274_s19] sm:$0x3] %vm922_vm1, %v918_v63 }
 0x387   : > { %1130 = shalt.err (!%p1127_p3)
}
 0x388   : > { %s1131_s10 = scalar_lea.hbm %s1433_s23, 32  ;;  %s1135_s16 = scalar_lea.hbm %s1482_s7, 64 }
 0x389   : > { %p1132_p4 = scmp.ne.s32.totalorder %s1433_s23, %s1131_s10  ;;  %p1136_p9 = scmp.lt.u32.totalorder %s1433_s23, %s1482_s7 }
 0x38a   : > { %p1137_p10 = scmp.lt.u32.totalorder %s1135_s16, %s1131_s10  ;;  %p1139_p12 = scmp.lt.u32.totalorder %s1131_s10, %s1433_s23 }
 0x38b   : > { %p1133_p7 = pnand %p1132_p4, %p1267_p5 }
 0x38c   : > { %p1138_p11 = por %p1137_p10, %p1136_p9 }
 0x38d   : > { %p1134_p8 = pneg %p1133_p7 }
 0x38e   : > { %p1140_p13 = por %p1139_p12, %p1138_p11 }
 0x390   : > { %p1141_p0 = pnand %p1140_p13, %p1134_p8 }
 0x392   : > { %1144 = shalt.err (!%p1141_p0)
}
 0x393   : > { %1068 = dma.vmem_to_hbm [thread:$0]  (%p1267_p5), %s1435_s20, 32, %s1433_s23, %s926_s24  }
 0x394 PF: > { %p1074_p1 = scmp.ge.s32.totalorder %s1179_s29, 2  ;;  %s952_s19 = sand.u32 1, %s1167_s26  }
 0x395   : > { %s953_s21 = scalar_lea.sflag [#allocation4], %s952_s19 }
 0x396   : > { %p1071_p2 = pnand %p1074_p1, %p1271_p6 }
 0x398   : > { %1162 = dma.done.wait (!%p1071_p2), %s953_s21, 32  }
 0x399   : > { %1164 = vsyncadd (!%p1071_p2), %s953_s21, 4294967264  ;;  %p19_p3 = scmp.ge.s32.totalorder %s1254_s8, 4   ;;  %s1485_s26 = smov %s1171_s27 }
 0x39a   : > { %s1486_s27 = smov %s1175_s28  ;;  %s1487_s28 = smov %s1265_s11 }
 0x39b   : > { %s1488_s29 = smov %s1254_s8  ;;  %21 = sbr.rel (!%p19_p3) target bundleno = 6 (0x6), region = 87 }
 0x3a2   :  { %958 = vsyncpa [#allocation4], 1 }
 0x3a3   :  { %960 = vsyncpa [#allocation4 + $0x1], 1 }

</bundles_post_ra>
